<compile_context>
chip_gen: v7x
topology: tpu7x:2x2x1
jax: 0.10.0
libtpu: 0.0.40
codegen_flags: <defaults>
</compile_context>

<pallas_src>
import jax
import jax.numpy as jnp
from jax.experimental import pallas as pl
from jax.experimental.pallas import tpu as pltpu

# ---------------------------------------------------------------------------
# Config (small, deterministic, consistent with an LM forward)
# ---------------------------------------------------------------------------
B = 2              # batch
S = 8              # sequence length
H = 32             # hidden size
FF = 128           # MLP inner size
V = 64             # vocab size
VP = 128           # vocab padded to a full lane tile (lane-dense stores)
EOS_TOKEN_ID = 0
# label_map keys = tokenizer.encode(label_word)[0] for each label -> token ids
INTEREST_INDEX = (3, 17, 42, 5)   # static, like list(self.label_map.keys())
L = len(INTEREST_INDEX)
BS = B * S
BPAD = 8                               # sublane-padded batch rows for head matmuls
SLAB_ROWS = ((3 * B + 7) // 8) * 8     # packed head-output slab sublanes (=8)

assert max(INTEREST_INDEX) < V
assert 3 * B <= SLAB_ROWS
assert B <= BPAD


# ---------------------------------------------------------------------------
# Fused kernel: embedding -> MLP/LN/LM-head -> pred-pos gather -> label softmax
# ---------------------------------------------------------------------------
def fused_lm_kernel(flat_pred_ref,                     # SMEM scalar prefetch (B,)
                    ids_mask_ref, wte_ref, wpe_flat_ref, w1_ref, w2_ref,
                    gb_ref, wlm_ref,
                    logits_ref, head_ref):
    f32 = jnp.float32
    bf16 = jnp.bfloat16

    ids_flat = ids_mask_ref[:, 0:1]                       # (BS, 1) int32
    mask = ids_mask_ref[:, 1:2].astype(f32)               # (BS, 1) f32 in {0, 1}

    # ---- embedding: token one-hot gather rides the MXU; mask applied once ----
    v_iota = jax.lax.broadcasted_iota(jnp.int32, (BS, V), 1)
    tok_oh = (v_iota == ids_flat).astype(bf16)            # (BS, V) exact one-hot
    x = jnp.dot(tok_oh, wte_ref[...], preferred_element_type=f32)   # (BS, H)
    x = (x + wpe_flat_ref[...].astype(f32)) * mask        # (BS, H) f32

    # ---- synthetic LM body: MLP(gelu) + residual + layernorm + LM head ------
    a = jnp.dot(x.astype(bf16), w1_ref[...], preferred_element_type=f32)  # (BS, FF)
    a = jax.nn.gelu(a, approximate=True)
    h = x + jnp.dot(a.astype(bf16), w2_ref[...], preferred_element_type=f32)

    mu = jnp.mean(h, axis=-1, keepdims=True)                              # f32 LN
    var = jnp.mean((h - mu) * (h - mu), axis=-1, keepdims=True)
    hn = (h - mu) * jax.lax.rsqrt(var + 1e-5)
    hn = hn * gb_ref[0:1, :] + gb_ref[1:2, :]

    logits = jnp.dot(hn.astype(bf16), wlm_ref[...],
                     preferred_element_type=f32)                          # (BS, VP)
    logits_ref[...] = logits            # single unmasked lane-dense store

    # ---- LMForwardAPI head: prediction-row gather as one f32 MXU dot --------
    # flat_pred (= pred_pos + S*b) comes precomputed via scalar prefetch (SMEM);
    # rows >= B of the one-hot are zero (sublane padding for a clean MXU tile).
    b_iota = jax.lax.broadcasted_iota(jnp.int32, (BPAD, BS), 0)
    r_iota = jax.lax.broadcasted_iota(jnp.int32, (BPAD, BS), 1)
    fp = jnp.full((BPAD, BS), -1, jnp.int32)
    for b in range(B):                                     # B static & tiny
        fp = jnp.where(b_iota == b, flat_pred_ref[b], fp)
    gather_oh = (r_iota == fp).astype(f32)                 # (BPAD, BS) one-hot
    # both operands f32; one-hot operand keeps the MXU dot exact
    ori = jnp.dot(gather_oh, logits, preferred_element_type=f32)      # (BPAD, VP)

    # ---- interest-column select: selector built in-kernel, one MXU dot ------
    col_1d = jax.lax.broadcasted_iota(jnp.int32, (1, VP), 1)
    tgt = jnp.full((1, VP), -1, jnp.int32)                 # -1 -> all-zero column
    for j, idx in enumerate(INTEREST_INDEX):
        tgt = jnp.where(col_1d == j, idx, tgt)
    row_iota = jax.lax.broadcasted_iota(jnp.int32, (VP, VP), 0)
    sel = (row_iota == tgt).astype(f32)                    # sel[idx_j, j] = 1
    lab_wide = jnp.dot(ori, sel, preferred_element_type=f32)          # (BPAD, VP)

    # ---- masked softmax over the first L lanes (f32) ------------------------
    lane = jax.lax.broadcasted_iota(jnp.int32, (BPAD, VP), 1)
    lab_m = jnp.where(lane < L, lab_wide, jnp.full_like(lab_wide, -1e30))
    m = jnp.max(lab_m, axis=-1, keepdims=True)
    e = jnp.exp(lab_m - m)                                 # masked lanes underflow to 0
    probs_wide = e / jnp.sum(e, axis=-1, keepdims=True)

    # ---- pack ori_logits / label_logits / probs into one (8, 128) tile ------
    head_ref[0:B, :] = ori[0:B, :]
    head_ref[B:2 * B, :] = lab_wide[0:B, :]
    head_ref[2 * B:3 * B, :] = probs_wide[0:B, :]
    if SLAB_ROWS > 3 * B:
        head_ref[3 * B:SLAB_ROWS, :] = jnp.zeros((SLAB_ROWS - 3 * B, VP), f32)


def _fused_forward(flat_pred, ids_mask, params):
    return pl.pallas_call(
        fused_lm_kernel,
        out_shape=(
            jax.ShapeDtypeStruct((BS, VP), jnp.float32),         # full LM logits (padded)
            jax.ShapeDtypeStruct((SLAB_ROWS, VP), jnp.float32),  # packed head slab
        ),
        grid_spec=pltpu.PrefetchScalarGridSpec(
            num_scalar_prefetch=1,                   # flat_pred -> SMEM
            grid=(1,),
            in_specs=[
                pl.BlockSpec((BS, 2), lambda i, fp: (0, 0)),     # ids+mask packed (int32)
                pl.BlockSpec((V, H), lambda i, fp: (0, 0)),      # wte (bf16)
                pl.BlockSpec((BS, H), lambda i, fp: (0, 0)),     # wpe tiled over batch (bf16)
                pl.BlockSpec((H, FF), lambda i, fp: (0, 0)),     # w1 (bf16)
                pl.BlockSpec((FF, H), lambda i, fp: (0, 0)),     # w2 (bf16)
                pl.BlockSpec((2, H), lambda i, fp: (0, 0)),      # gamma/beta packed (f32)
                pl.BlockSpec((H, VP), lambda i, fp: (0, 0)),     # wlm, vocab-padded (bf16)
            ],
            out_specs=(
                pl.BlockSpec((BS, VP), lambda i, fp: (0, 0)),
                pl.BlockSpec((SLAB_ROWS, VP), lambda i, fp: (0, 0)),
            ),
        ),
        compiler_params=pltpu.CompilerParams(
            dimension_semantics=("arbitrary",)),
    )(flat_pred, ids_mask, params["wte"], params["wpe_flat"],
      params["w1"], params["w2"], params["gb"], params["wlm_pad"])


# ---------------------------------------------------------------------------
# LMForwardAPI.forward equivalent (thin JAX wrapper: packing + slab slicing)
# ---------------------------------------------------------------------------
@jax.jit
def lm_forward_api_forward(input_ids, attention_mask, params):
    # TODO(synk): the real module delegates to gpt2-xl / gpt-j attention with
    # attention_mask / past_key_values / position_ids; those external-model
    # paths (inactive when use_past_key_values=False) are replaced by the
    # synthetic position-wise LM inside the fused kernel.
    ids_mask = jnp.concatenate(
        [input_ids.reshape(BS, 1),
         attention_mask.reshape(BS, 1).astype(jnp.int32)], axis=1)          # (BS, 2)

    # prediction_pos = (input_ids != eos).sum(-1) - 1 ; all-EOS row wraps to the
    # last position (torch negative indexing).  Passed to the kernel via SMEM.
    is_not_eos = (input_ids != EOS_TOKEN_ID).astype(jnp.int32)
    pred_pos = jnp.sum(is_not_eos, axis=1) - 1
    pred_pos = jnp.where(pred_pos < 0, pred_pos + S, pred_pos)
    flat_pred = (pred_pos + S * jnp.arange(B, dtype=jnp.int32)).astype(jnp.int32)

    logits_pad, head = _fused_forward(flat_pred, ids_mask, params)

    logits3d = logits_pad[:, :V].reshape(B, S, V)          # results['logits']
    ori_logits = head[0:B, :V]
    label_logits = head[B:2 * B, :L]
    probs = head[2 * B:3 * B, :L]

    # use_calibration_probs=False by default -> no division by calibration_probs
    return {
        "probs": probs,
        "logits": label_logits,
        "results": {"logits": logits3d},
        "ori_logits": ori_logits,
    }


# ---------------------------------------------------------------------------
# Parameters (weights stored in bf16 for the MXU; LN params in f32)
# ---------------------------------------------------------------------------
def init_params(key):
    ks = jax.random.split(key, 5)
    scale = 0.05
    wte = (scale * jax.random.normal(ks[0], (V, H), jnp.float32)).astype(jnp.bfloat16)
    wpe = (scale * jax.random.normal(ks[1], (S, H), jnp.float32)).astype(jnp.bfloat16)
    w1 = (scale * jax.random.normal(ks[2], (H, FF), jnp.float32)).astype(jnp.bfloat16)
    w2 = (scale * jax.random.normal(ks[3], (FF, H), jnp.float32)).astype(jnp.bfloat16)
    wlm = (scale * jax.random.normal(ks[4], (H, V), jnp.float32)).astype(jnp.bfloat16)
    gamma = jnp.ones((1, H), jnp.float32)
    beta = jnp.zeros((1, H), jnp.float32)
    # kernel-side constants: batch-tiled wpe, lane-padded LM head, packed LN params
    wpe_flat = jnp.tile(wpe, (B, 1))                                     # (BS, H)
    wlm_pad = jnp.zeros((H, VP), jnp.bfloat16).at[:, :V].set(wlm)        # (H, VP)
    gb = jnp.concatenate([gamma, beta], axis=0)                          # (2, H)
    return dict(wte=wte, wpe=wpe, w1=w1, w2=w2, wlm=wlm,
                gamma=gamma, beta=beta,
                wpe_flat=wpe_flat, wlm_pad=wlm_pad, gb=gb)


# ---------------------------------------------------------------------------
# Pure-JAX reference of the same forward (same bf16-matmul / f32-accum LM)
# ---------------------------------------------------------------------------
def reference_forward(input_ids, attention_mask, params):
    f32, bf16 = jnp.float32, jnp.bfloat16
    pos = jnp.arange(S, dtype=jnp.int32)
    x = (jnp.take(params["wte"], input_ids, axis=0).astype(f32)
         + params["wpe"].astype(f32)[pos][None])
    x = x * attention_mask[:, :, None].astype(f32)
    a = jax.nn.gelu(jnp.dot(x.astype(bf16), params["w1"],
                            preferred_element_type=f32), approximate=True)
    h = x + jnp.dot(a.astype(bf16), params["w2"], preferred_element_type=f32)
    mu = h.mean(-1, keepdims=True)
    var = ((h - mu) ** 2).mean(-1, keepdims=True)
    hn = (h - mu) * jax.lax.rsqrt(var + 1e-5) * params["gamma"] + params["beta"]
    logits3d = jnp.dot(hn.astype(bf16), params["wlm"], preferred_element_type=f32)
    is_not_eos = (input_ids != EOS_TOKEN_ID)
    pred_pos = is_not_eos.sum(1) - 1
    ori = logits3d[jnp.arange(B), pred_pos, :]
    lab = ori[:, jnp.array(INTEREST_INDEX)]
    probs = jax.nn.softmax(lab, axis=-1)
    return logits3d, ori, lab, probs


if __name__ == "__main__":
    key = jax.random.PRNGKey(0)
    params = init_params(key)

    # deterministic inputs: tokens in [1, V), right-padded with EOS (=0)
    tok_key = jax.random.fold_in(key, 1)
    toks = jax.random.randint(tok_key, (B, S), 1, V, dtype=jnp.int32)
    # row 0: 6 real tokens + 2 EOS ; row 1: 8 real tokens
    pad_mask = jnp.array([[1, 1, 1, 1, 1, 1, 0, 0],
                          [1, 1, 1, 1, 1, 1, 1, 1]], dtype=jnp.int32)
    input_ids = toks * pad_mask + EOS_TOKEN_ID * (1 - pad_mask)
    attention_mask = pad_mask

    # mirror of the torch assert: non-EOS positions form a prefix
    is_not_eos = (input_ids != EOS_TOKEN_ID).astype(jnp.float32)
    assert bool(jnp.all(is_not_eos[:, :-1] - is_not_eos[:, 1:] >= 0))

    out = lm_forward_api_forward(input_ids, attention_mask, params)
    jax.block_until_ready(out)

    ref_logits3d, ref_ori, ref_lab, ref_probs = reference_forward(
        input_ids, attention_mask, params)

    tol = dict(atol=2e-4, rtol=2e-4)
    assert out["probs"].shape == (B, L)
    assert out["logits"].shape == (B, L)
    assert out["ori_logits"].shape == (B, V)
    assert out["results"]["logits"].shape == (B, S, V)
    assert jnp.allclose(out["results"]["logits"], ref_logits3d, **tol)
    assert jnp.allclose(out["ori_logits"], ref_ori, **tol)
    assert jnp.allclose(out["logits"], ref_lab, **tol)
    assert jnp.allclose(out["probs"], ref_probs, **tol)
    assert bool(jnp.allclose(out["probs"].sum(-1), 1.0, atol=1e-5))

    print("KERNEL_OK")
</pallas_src>

<mosaic_0001>
module attributes {stable_mosaic.version = 11 : i64} {
  func.func @fused_lm_kernel(%arg0: i32, %arg1: memref<2xi32, #tpu.memory_space<smem>>, %arg2: memref<16x2xi32, #tpu.memory_space<vmem>>, %arg3: memref<64x32xbf16, #tpu.memory_space<vmem>>, %arg4: memref<16x32xbf16, #tpu.memory_space<vmem>>, %arg5: memref<32x128xbf16, #tpu.memory_space<vmem>>, %arg6: memref<128x32xbf16, #tpu.memory_space<vmem>>, %arg7: memref<2x32xf32, #tpu.memory_space<vmem>>, %arg8: memref<32x128xbf16, #tpu.memory_space<vmem>>, %arg9: memref<16x128xf32, #tpu.memory_space<vmem>>, %arg10: memref<8x128xf32, #tpu.memory_space<vmem>>) attributes {dimension_semantics = [#tpu.dimension_semantics<arbitrary>], iteration_bounds = array<i64: 1>, scalar_prefetch = 1 : i64, scratch_operands = 0 : i64, tpu.core_type = #tpu.core_type<tc>, window_params = [{pipeline_mode = #tpu.pipeline_mode<synchronous>, transform_indices = @transform_0, window_bounds = array<i64: 16, 2>}, {pipeline_mode = #tpu.pipeline_mode<synchronous>, transform_indices = @transform_1, window_bounds = array<i64: 64, 32>}, {pipeline_mode = #tpu.pipeline_mode<synchronous>, transform_indices = @transform_2, window_bounds = array<i64: 16, 32>}, {pipeline_mode = #tpu.pipeline_mode<synchronous>, transform_indices = @transform_3, window_bounds = array<i64: 32, 128>}, {pipeline_mode = #tpu.pipeline_mode<synchronous>, transform_indices = @transform_4, window_bounds = array<i64: 128, 32>}, {pipeline_mode = #tpu.pipeline_mode<synchronous>, transform_indices = @transform_5, window_bounds = array<i64: 2, 32>}, {pipeline_mode = #tpu.pipeline_mode<synchronous>, transform_indices = @transform_6, window_bounds = array<i64: 32, 128>}, {pipeline_mode = #tpu.pipeline_mode<synchronous>, transform_indices = @transform_7, window_bounds = array<i64: 16, 128>}, {pipeline_mode = #tpu.pipeline_mode<synchronous>, transform_indices = @transform_8, window_bounds = array<i64: 8, 128>}]} {
    %c0 = arith.constant 0 : index
    %c0_0 = arith.constant 0 : index
    %0 = vector.load %arg2[%c0, %c0_0] : memref<16x2xi32, #tpu.memory_space<vmem>>, vector<16x1xi32>
    %c0_1 = arith.constant 0 : index
    %c1 = arith.constant 1 : index
    %1 = vector.load %arg2[%c0_1, %c1] : memref<16x2xi32, #tpu.memory_space<vmem>>, vector<16x1xi32>
    %2 = arith.sitofp %1 : vector<16x1xi32> to vector<16x1xf32>
    %3 = tpu.iota {dimensions = array<i32: 1>} : vector<16x64xi32>
    %4 = vector.broadcast %0 : vector<16x1xi32> to vector<16x64xi32>
    %5 = arith.cmpi eq, %3, %4 : vector<16x64xi32>
    %6 = arith.extui %5 : vector<16x64xi1> to vector<16x64xi32>
    %7 = arith.sitofp %6 : vector<16x64xi32> to vector<16x64xf32>
    %8 = arith.truncf %7 : vector<16x64xf32> to vector<16x64xbf16>
    %c0_2 = arith.constant 0 : index
    %c0_3 = arith.constant 0 : index
    %9 = vector.load %arg3[%c0_2, %c0_3] : memref<64x32xbf16, #tpu.memory_space<vmem>>, vector<64x32xbf16>
    %cst = arith.constant dense<0.000000e+00> : vector<16x32xf32>
    %10 = tpu.matmul %8, %9, %cst {dimension_numbers = #tpu.dot_dimension_numbers<[1], [0], [0], [1], [0, 0, 1, 1], [], []>} : vector<16x64xbf16>, vector<64x32xbf16>, vector<16x32xf32> -> vector<16x32xf32>
    %c0_4 = arith.constant 0 : index
    %c0_5 = arith.constant 0 : index
    %11 = vector.load %arg4[%c0_4, %c0_5] : memref<16x32xbf16, #tpu.memory_space<vmem>>, vector<16x32xbf16>
    %12 = arith.extf %11 : vector<16x32xbf16> to vector<16x32xf32>
    %13 = arith.addf %10, %12 : vector<16x32xf32>
    %14 = vector.broadcast %2 : vector<16x1xf32> to vector<16x32xf32>
    %15 = arith.mulf %13, %14 : vector<16x32xf32>
    %16 = arith.truncf %15 : vector<16x32xf32> to vector<16x32xbf16>
    %c0_6 = arith.constant 0 : index
    %c0_7 = arith.constant 0 : index
    %17 = vector.load %arg5[%c0_6, %c0_7] : memref<32x128xbf16, #tpu.memory_space<vmem>>, vector<32x128xbf16>
    %cst_8 = arith.constant dense<0.000000e+00> : vector<16x128xf32>
    %18 = tpu.matmul %16, %17, %cst_8 {dimension_numbers = #tpu.dot_dimension_numbers<[1], [0], [0], [1], [0, 0, 1, 1], [], []>} : vector<16x32xbf16>, vector<32x128xbf16>, vector<16x128xf32> -> vector<16x128xf32>
    %19 = arith.mulf %18, %18 : vector<16x128xf32>
    %20 = arith.mulf %18, %19 : vector<16x128xf32>
    %cst_9 = arith.constant 4.471500e-02 : f32
    %21 = vector.broadcast %cst_9 : f32 to vector<16x128xf32>
    %22 = arith.mulf %21, %20 : vector<16x128xf32>
    %23 = arith.addf %18, %22 : vector<16x128xf32>
    %cst_10 = arith.constant 0.797884583 : f32
    %24 = vector.broadcast %cst_10 : f32 to vector<16x128xf32>
    %25 = arith.mulf %24, %23 : vector<16x128xf32>
    %26 = math.tanh %25 : vector<16x128xf32>
    %cst_11 = arith.constant 1.000000e+00 : f32
    %27 = vector.broadcast %cst_11 : f32 to vector<16x128xf32>
    %28 = arith.addf %27, %26 : vector<16x128xf32>
    %cst_12 = arith.constant 5.000000e-01 : f32
    %29 = vector.broadcast %cst_12 : f32 to vector<16x128xf32>
    %30 = arith.mulf %29, %28 : vector<16x128xf32>
    %31 = arith.mulf %18, %30 : vector<16x128xf32>
    %32 = arith.truncf %31 : vector<16x128xf32> to vector<16x128xbf16>
    %c0_13 = arith.constant 0 : index
    %c0_14 = arith.constant 0 : index
    %33 = vector.load %arg6[%c0_13, %c0_14] : memref<128x32xbf16, #tpu.memory_space<vmem>>, vector<128x32xbf16>
    %cst_15 = arith.constant dense<0.000000e+00> : vector<16x32xf32>
    %34 = tpu.matmul %32, %33, %cst_15 {dimension_numbers = #tpu.dot_dimension_numbers<[1], [0], [0], [1], [0, 0, 1, 1], [], []>} : vector<16x128xbf16>, vector<128x32xbf16>, vector<16x32xf32> -> vector<16x32xf32>
    %35 = arith.addf %15, %34 : vector<16x32xf32>
    %cst_16 = arith.constant dense<0.000000e+00> : vector<16xf32>
    %36 = vector.multi_reduction <add>, %35, %cst_16 [1] : vector<16x32xf32> to vector<16xf32>
    %37 = vector.shape_cast %36 : vector<16xf32> to vector<16x1xf32>
    %cst_17 = arith.constant 3.200000e+01 : f32
    %38 = vector.broadcast %cst_17 : f32 to vector<16x1xf32>
    %39 = arith.divf %37, %38 : vector<16x1xf32>
    %40 = vector.broadcast %39 : vector<16x1xf32> to vector<16x32xf32>
    %41 = arith.subf %35, %40 : vector<16x32xf32>
    %42 = vector.broadcast %39 : vector<16x1xf32> to vector<16x32xf32>
    %43 = arith.subf %35, %42 : vector<16x32xf32>
    %44 = arith.mulf %41, %43 : vector<16x32xf32>
    %cst_18 = arith.constant dense<0.000000e+00> : vector<16xf32>
    %45 = vector.multi_reduction <add>, %44, %cst_18 [1] : vector<16x32xf32> to vector<16xf32>
    %46 = vector.shape_cast %45 : vector<16xf32> to vector<16x1xf32>
    %cst_19 = arith.constant 3.200000e+01 : f32
    %47 = vector.broadcast %cst_19 : f32 to vector<16x1xf32>
    %48 = arith.divf %46, %47 : vector<16x1xf32>
    %49 = vector.broadcast %39 : vector<16x1xf32> to vector<16x32xf32>
    %50 = arith.subf %35, %49 : vector<16x32xf32>
    %cst_20 = arith.constant 9.99999974E-6 : f32
    %51 = vector.broadcast %cst_20 : f32 to vector<16x1xf32>
    %52 = arith.addf %48, %51 : vector<16x1xf32>
    %53 = math.rsqrt %52 : vector<16x1xf32>
    %54 = vector.broadcast %53 : vector<16x1xf32> to vector<16x32xf32>
    %55 = arith.mulf %50, %54 : vector<16x32xf32>
    %c0_21 = arith.constant 0 : index
    %c0_22 = arith.constant 0 : index
    %56 = vector.load %arg7[%c0_21, %c0_22] : memref<2x32xf32, #tpu.memory_space<vmem>>, vector<1x32xf32>
    %57 = vector.broadcast %56 : vector<1x32xf32> to vector<16x32xf32>
    %58 = arith.mulf %55, %57 : vector<16x32xf32>
    %c1_23 = arith.constant 1 : index
    %c0_24 = arith.constant 0 : index
    %59 = vector.load %arg7[%c1_23, %c0_24] : memref<2x32xf32, #tpu.memory_space<vmem>>, vector<1x32xf32>
    %60 = vector.broadcast %59 : vector<1x32xf32> to vector<16x32xf32>
    %61 = arith.addf %58, %60 : vector<16x32xf32>
    %62 = arith.truncf %61 : vector<16x32xf32> to vector<16x32xbf16>
    %c0_25 = arith.constant 0 : index
    %c0_26 = arith.constant 0 : index
    %63 = vector.load %arg8[%c0_25, %c0_26] : memref<32x128xbf16, #tpu.memory_space<vmem>>, vector<32x128xbf16>
    %cst_27 = arith.constant dense<0.000000e+00> : vector<16x128xf32>
    %64 = tpu.matmul %62, %63, %cst_27 {dimension_numbers = #tpu.dot_dimension_numbers<[1], [0], [0], [1], [0, 0, 1, 1], [], []>} : vector<16x32xbf16>, vector<32x128xbf16>, vector<16x128xf32> -> vector<16x128xf32>
    %c0_28 = arith.constant 0 : index
    %c0_29 = arith.constant 0 : index
    %65 = vector.load %arg9[%c0_28, %c0_29] : memref<16x128xf32, #tpu.memory_space<vmem>>, vector<16x128xf32>
    tpu.vector_store %arg9[%c0_28, %c0_29], %64 {strides = array<i32>} : memref<16x128xf32, #tpu.memory_space<vmem>>, vector<16x128xf32>,
    %66 = tpu.iota {dimensions = array<i32: 0>} : vector<8x16xi32>
    %67 = tpu.iota {dimensions = array<i32: 1>} : vector<8x16xi32>
    %c-1_i32 = arith.constant -1 : i32
    %68 = vector.broadcast %c-1_i32 : i32 to vector<8x16xi32>
    %c0_i32 = arith.constant 0 : i32
    %69 = vector.broadcast %c0_i32 : i32 to vector<8x16xi32>
    %70 = arith.cmpi eq, %66, %69 : vector<8x16xi32>
    %c0_30 = arith.constant 0 : index
    %71 = memref.load %arg1[%c0_30] : memref<2xi32, #tpu.memory_space<smem>>
    %72 = vector.broadcast %71 : i32 to vector<8x16xi32>
    %73 = arith.select %70, %72, %68 : vector<8x16xi1>, vector<8x16xi32>
    %c1_i32 = arith.constant 1 : i32
    %74 = vector.broadcast %c1_i32 : i32 to vector<8x16xi32>
    %75 = arith.cmpi eq, %66, %74 : vector<8x16xi32>
    %c1_31 = arith.constant 1 : index
    %76 = memref.load %arg1[%c1_31] : memref<2xi32, #tpu.memory_space<smem>>
    %77 = vector.broadcast %76 : i32 to vector<8x16xi32>
    %78 = arith.select %75, %77, %73 : vector<8x16xi1>, vector<8x16xi32>
    %79 = arith.cmpi eq, %67, %78 : vector<8x16xi32>
    %80 = arith.extui %79 : vector<8x16xi1> to vector<8x16xi32>
    %81 = arith.sitofp %80 : vector<8x16xi32> to vector<8x16xf32>
    %cst_32 = arith.constant dense<0.000000e+00> : vector<8x128xf32>
    %82 = tpu.matmul %81, %64, %cst_32 {dimension_numbers = #tpu.dot_dimension_numbers<[1], [0], [0], [1], [0, 0, 1, 1], [], []>} : vector<8x16xf32>, vector<16x128xf32>, vector<8x128xf32> -> vector<8x128xf32>
    %83 = tpu.iota {dimensions = array<i32: 1>} : vector<1x128xi32>
    %c-1_i32_33 = arith.constant -1 : i32
    %84 = vector.broadcast %c-1_i32_33 : i32 to vector<1x128xi32>
    %c0_i32_34 = arith.constant 0 : i32
    %85 = vector.broadcast %c0_i32_34 : i32 to vector<1x128xi32>
    %86 = arith.cmpi eq, %83, %85 : vector<1x128xi32>
    %c3_i32 = arith.constant 3 : i32
    %87 = vector.broadcast %c3_i32 : i32 to vector<1x128xi32>
    %88 = arith.select %86, %87, %84 : vector<1x128xi1>, vector<1x128xi32>
    %c1_i32_35 = arith.constant 1 : i32
    %89 = vector.broadcast %c1_i32_35 : i32 to vector<1x128xi32>
    %90 = arith.cmpi eq, %83, %89 : vector<1x128xi32>
    %c17_i32 = arith.constant 17 : i32
    %91 = vector.broadcast %c17_i32 : i32 to vector<1x128xi32>
    %92 = arith.select %90, %91, %88 : vector<1x128xi1>, vector<1x128xi32>
    %c2_i32 = arith.constant 2 : i32
    %93 = vector.broadcast %c2_i32 : i32 to vector<1x128xi32>
    %94 = arith.cmpi eq, %83, %93 : vector<1x128xi32>
    %c42_i32 = arith.constant 42 : i32
    %95 = vector.broadcast %c42_i32 : i32 to vector<1x128xi32>
    %96 = arith.select %94, %95, %92 : vector<1x128xi1>, vector<1x128xi32>
    %c3_i32_36 = arith.constant 3 : i32
    %97 = vector.broadcast %c3_i32_36 : i32 to vector<1x128xi32>
    %98 = arith.cmpi eq, %83, %97 : vector<1x128xi32>
    %c5_i32 = arith.constant 5 : i32
    %99 = vector.broadcast %c5_i32 : i32 to vector<1x128xi32>
    %100 = arith.select %98, %99, %96 : vector<1x128xi1>, vector<1x128xi32>
    %101 = tpu.iota {dimensions = array<i32: 0>} : vector<128x128xi32>
    %102 = vector.broadcast %100 : vector<1x128xi32> to vector<128x128xi32>
    %103 = arith.cmpi eq, %101, %102 : vector<128x128xi32>
    %104 = arith.extui %103 : vector<128x128xi1> to vector<128x128xi32>
    %105 = arith.sitofp %104 : vector<128x128xi32> to vector<128x128xf32>
    %cst_37 = arith.constant dense<0.000000e+00> : vector<8x128xf32>
    %106 = tpu.matmul %82, %105, %cst_37 {dimension_numbers = #tpu.dot_dimension_numbers<[1], [0], [0], [1], [0, 0, 1, 1], [], []>} : vector<8x128xf32>, vector<128x128xf32>, vector<8x128xf32> -> vector<8x128xf32>
    %107 = tpu.iota {dimensions = array<i32: 1>} : vector<8x128xi32>
    %c4_i32 = arith.constant 4 : i32
    %108 = vector.broadcast %c4_i32 : i32 to vector<8x128xi32>
    %109 = arith.cmpi slt, %107, %108 : vector<8x128xi32>
    %cst_38 = arith.constant -1.000000e+30 : f32
    %110 = vector.broadcast %cst_38 : f32 to vector<8x128xf32>
    %111 = arith.select %109, %106, %110 : vector<8x128xi1>, vector<8x128xf32>
    %cst_39 = arith.constant dense<0xFF800000> : vector<8xf32>
    %112 = vector.multi_reduction <maximumf>, %111, %cst_39 [1] : vector<8x128xf32> to vector<8xf32>
    %113 = vector.shape_cast %112 : vector<8xf32> to vector<8x1xf32>
    %114 = vector.broadcast %113 : vector<8x1xf32> to vector<8x128xf32>
    %115 = arith.subf %111, %114 : vector<8x128xf32>
    %116 = math.exp %115 : vector<8x128xf32>
    %cst_40 = arith.constant dense<0.000000e+00> : vector<8xf32>
    %117 = vector.multi_reduction <add>, %116, %cst_40 [1] : vector<8x128xf32> to vector<8xf32>
    %118 = vector.shape_cast %117 : vector<8xf32> to vector<8x1xf32>
    %119 = vector.broadcast %118 : vector<8x1xf32> to vector<8x128xf32>
    %120 = arith.divf %116, %119 : vector<8x128xf32>
    %121 = vector.extract_strided_slice %82 {offsets = [0, 0], sizes = [2, 128], strides = [1, 1]} : vector<8x128xf32> to vector<2x128xf32>
    %c0_41 = arith.constant 0 : index
    %c0_42 = arith.constant 0 : index
    %122 = vector.load %arg10[%c0_41, %c0_42] : memref<8x128xf32, #tpu.memory_space<vmem>>, vector<2x128xf32>
    tpu.vector_store %arg10[%c0_41, %c0_42], %121 {strides = array<i32>} : memref<8x128xf32, #tpu.memory_space<vmem>>, vector<2x128xf32>,
    %123 = vector.extract_strided_slice %106 {offsets = [0, 0], sizes = [2, 128], strides = [1, 1]} : vector<8x128xf32> to vector<2x128xf32>
    %c2 = arith.constant 2 : index
    %c0_43 = arith.constant 0 : index
    %124 = vector.load %arg10[%c2, %c0_43] : memref<8x128xf32, #tpu.memory_space<vmem>>, vector<2x128xf32>
    tpu.vector_store %arg10[%c2, %c0_43], %123 {strides = array<i32>} : memref<8x128xf32, #tpu.memory_space<vmem>>, vector<2x128xf32>,
    %125 = vector.extract_strided_slice %120 {offsets = [0, 0], sizes = [2, 128], strides = [1, 1]} : vector<8x128xf32> to vector<2x128xf32>
    %c4 = arith.constant 4 : index
    %c0_44 = arith.constant 0 : index
    %126 = vector.load %arg10[%c4, %c0_44] : memref<8x128xf32, #tpu.memory_space<vmem>>, vector<2x128xf32>
    tpu.vector_store %arg10[%c4, %c0_44], %125 {strides = array<i32>} : memref<8x128xf32, #tpu.memory_space<vmem>>, vector<2x128xf32>,
    %cst_45 = arith.constant 0.000000e+00 : f32
    %127 = vector.broadcast %cst_45 : f32 to vector<2x128xf32>
    %c6 = arith.constant 6 : index
    %c0_46 = arith.constant 0 : index
    %128 = vector.load %arg10[%c6, %c0_46] : memref<8x128xf32, #tpu.memory_space<vmem>>, vector<2x128xf32>
    tpu.vector_store %arg10[%c6, %c0_46], %127 {strides = array<i32>} : memref<8x128xf32, #tpu.memory_space<vmem>>, vector<2x128xf32>,
    return
  }
  func.func @transform_0(%arg0: i32, %arg1: memref<2xi32, #tpu.memory_space<smem>>) -> (i32, i32) {
    %c0_i32 = arith.constant 0 : i32
    %c0_i32_0 = arith.constant 0 : i32
    %c0_i32_1 = arith.constant 0 : i32
    return %c0_i32, %c0_i32_0 : i32, i32
  }
  func.func @transform_1(%arg0: i32, %arg1: memref<2xi32, #tpu.memory_space<smem>>) -> (i32, i32) {
    %c0_i32 = arith.constant 0 : i32
    %c0_i32_0 = arith.constant 0 : i32
    %c0_i32_1 = arith.constant 0 : i32
    return %c0_i32, %c0_i32_0 : i32, i32
  }
  func.func @transform_2(%arg0: i32, %arg1: memref<2xi32, #tpu.memory_space<smem>>) -> (i32, i32) {
    %c0_i32 = arith.constant 0 : i32
    %c0_i32_0 = arith.constant 0 : i32
    %c0_i32_1 = arith.constant 0 : i32
    return %c0_i32, %c0_i32_0 : i32, i32
  }
  func.func @transform_3(%arg0: i32, %arg1: memref<2xi32, #tpu.memory_space<smem>>) -> (i32, i32) {
    %c0_i32 = arith.constant 0 : i32
    %c0_i32_0 = arith.constant 0 : i32
    %c0_i32_1 = arith.constant 0 : i32
    return %c0_i32, %c0_i32_0 : i32, i32
  }
  func.func @transform_4(%arg0: i32, %arg1: memref<2xi32, #tpu.memory_space<smem>>) -> (i32, i32) {
    %c0_i32 = arith.constant 0 : i32
    %c0_i32_0 = arith.constant 0 : i32
    %c0_i32_1 = arith.constant 0 : i32
    return %c0_i32, %c0_i32_0 : i32, i32
  }
  func.func @transform_5(%arg0: i32, %arg1: memref<2xi32, #tpu.memory_space<smem>>) -> (i32, i32) {
    %c0_i32 = arith.constant 0 : i32
    %c0_i32_0 = arith.constant 0 : i32
    %c0_i32_1 = arith.constant 0 : i32
    return %c0_i32, %c0_i32_0 : i32, i32
  }
  func.func @transform_6(%arg0: i32, %arg1: memref<2xi32, #tpu.memory_space<smem>>) -> (i32, i32) {
    %c0_i32 = arith.constant 0 : i32
    %c0_i32_0 = arith.constant 0 : i32
    %c0_i32_1 = arith.constant 0 : i32
    return %c0_i32, %c0_i32_0 : i32, i32
  }
  func.func @transform_7(%arg0: i32, %arg1: memref<2xi32, #tpu.memory_space<smem>>) -> (i32, i32) {
    %c0_i32 = arith.constant 0 : i32
    %c0_i32_0 = arith.constant 0 : i32
    %c0_i32_1 = arith.constant 0 : i32
    return %c0_i32, %c0_i32_0 : i32, i32
  }
  func.func @transform_8(%arg0: i32, %arg1: memref<2xi32, #tpu.memory_space<smem>>) -> (i32, i32) {
    %c0_i32 = arith.constant 0 : i32
    %c0_i32_0 = arith.constant 0 : i32
    %c0_i32_1 = arith.constant 0 : i32
    return %c0_i32, %c0_i32_0 : i32, i32
  }
}

</mosaic_0001>

<bundles_post_ra>
// kernel: lm_forward_api_forward.1
= control target key start
LH: loop header
LB: loop body
LE: loop exit
PB: predicated region body
PF: predicated region fallthrough
CT: control target
= control target key end

     0   :  { %s1202_s0 = inlined_call_operand.vmem [shape: s32[2], index: 0, kind: input, shape index: {}]   ;;  %s1203_s1 = inlined_call_operand.vmem [shape: s32[16,2], index: 1, kind: input, shape index: {}]   ;;  %s1204_s2 = inlined_call_operand.vmem [shape: bf16[64,32], index: 2, kind: input, shape index: {}]   ;;  %s1205_s3 = inlined_call_operand.vmem [shape: bf16[16,32], index: 3, kind: input, shape index: {}]   ;;  %s1206_s4 = inlined_call_operand.vmem [shape: bf16[32,128], index: 4, kind: input, shape index: {}]   ;;  %s1207_s5 = inlined_call_operand.vmem [shape: bf16[128,32], index: 5, kind: input, shape index: {}]   ;;  %s1208_s6 = inlined_call_operand.vmem [shape: f32[2,32], index: 6, kind: input, shape index: {}]   ;;  %s1209_s7 = inlined_call_operand.vmem [shape: bf16[32,128], index: 7, kind: input, shape index: {}]   ;;  %s1210_s8 = inlined_call_operand.vmem [shape: f32[16,128], index: 8, kind: output, shape index: {0}]   ;;  %s1211_s9 = inlined_call_operand.vmem [shape: f32[8,128], index: 9, kind: output, shape index: {1}]  }
   0x1   :  { %s15_s11 = sshll.u32 %s1202_s0, 4  ;;  %s16_s11 = int_to_ptr.vmem [resolvable:$true] %s15_s11 }
   0x2   :  { %s949_s12 = scalar_lea.vmem %s16_s11, 16  ;;  %p954_p1 = scmp.lt.s32.totalorder %s16_s11, %s16_s11 }
   0x3   :  { %p950_p0 = scmp.ne.s32.totalorder %s16_s11, %s949_s12  ;;  %p955_p2 = scmp.lt.s32.totalorder %s949_s12, %s949_s12 }
   0x5   :  { %p956_p3 = por %p955_p2, %p954_p1 }
   0x7   :  { %p957_p4 = pnand %p956_p3, %p950_p0 }
   0x9   :  { %960 = shalt.err (!%p957_p4)  }
   0xa   :  { %s963_s13 = smov [#allocation3]  }
   0xb   :  { %18 = dma.vmem_to_smem %s16_s11, 16, %s963_s13, [#allocation2] }
   0xc   :  { %961 = dma.done.wait [#allocation2], 16 }
   0xd   :  { %962 = vsyncadd [#allocation2], 4294967280 }
   0xe   :  { %20 = sfence }
   0xf   :  { %v36_v0 = vld [vmem:[%s1203_s1] sm:$0xff]  ;;  %v964_v1 = vmov 0   ;;  %v965_v2 = vmov 0.0   ;;  %v37_v4 = vld [vmem:[%s1203_s1 + $0x8] sm:$0xff]  ;;  %v923_v6 = vld [vmem:[%s1204_s2 + $0x10] sm:$0xff]   ;;  %vm966_vm0 = vmmov 0   ;;  %v40_v11 = vlaneseq }
  0x10   :  { %918 = vset.pattern.permute.xlu0 %v964_v1  ;;  %793 = vmatprep.subr.bf16.mxu0 %v965_v2  ;;  %682 = vst [vmem:[%s1211_s9 + $0x6] sm:$0x3] %v965_v2  ;;  %v921_v3 = vld [vmem:[%s1204_s2] sm:$0xff]   ;;  %v922_v5 = vld [vmem:[%s1204_s2 + $0x8] sm:$0xff]   ;;  %v38_v7 = vcvt.s32.f32 %v36_v0  ;;  %v924_v8 = vld [vmem:[%s1204_s2 + $0x18] sm:$0xff]   ;;  %v967_v9 = vmov 1   ;;  %v39_v10 = vcvt.s32.f32 %v37_v4 }
  0x11   :  { %43 = vperm.xlu0 %918, %v36_v0   ;;  %805 = vmatprep.subr.bf16.mxu1 %v965_v2  ;;  %v1056_v12 = vand.u32 127, %v40_v11  ;;  %vm91_vm3 = vcmask 523264   ;;  %v925_v18 = vld [vmem:[%s1206_s4] sm:$0xff]   ;;  %v926_v19 = vld [vmem:[%s1206_s4 + $0x8] sm:$0xff]   ;;  %vm165_vm4 = vcmask 261120   ;;  %v929_v36 = vld [vmem:[%s1207_s5 + $0x10] sm:$0xff]  }
  0x12   :  { %794 = vmatpush3.bf16.msra.mxu0 %v921_v3  ;;  %801 = vmatprep.mubr.msk.bf16.mxu0 %vm966_vm0, %v965_v2  ;;  %v750_v20 = vld [vmem:[%s1205_s3] sm:$0xff]   ;;  %v928_v35 = vld [vmem:[%s1207_s5 + $0x8] sm:$0xff]   ;;  %v930_v37 = vld [vmem:[%s1207_s5 + $0x18] sm:$0xff]   ;;  %s443_s27 = sld [smem:[#allocation3]]  ;;  %s714_s28 = sld [smem:[#allocation3 + $0x1]]  ;;  %vm453_vm14 = vcmask 130048  }
  0x13   :  { %795 = vmatprep.subr.bf16.mxu0 %v965_v2  ;;  %809 = vmatprep.mubr.msk.bf16.mxu1 %vm966_vm0, %v965_v2  ;;  %v751_v21 = vunpack.c.l.bf16 %v750_v20  ;;  %v752_v23 = vunpack.c.h.bf16 %v750_v20  ;;  %v927_v34 = vld [vmem:[%s1207_s5] sm:$0xff]   ;;  %v932_v39 = vld [vmem:[%s1207_s5 + $0x28] sm:$0xff]   ;;  %v933_v40 = vld [vmem:[%s1207_s5 + $0x30] sm:$0xff]   ;;  %vm527_vm5 = vcmp.eq.s32.totalorder %v1056_v12, 0  ;;  %vm529_vm6 = vcmp.eq.s32.totalorder %v1056_v12, 1 }
  0x14   :  { %919 = vset.pattern.permute.xlu1 %v967_v9  ;;  %806 = vmatpush3.bf16.msra.mxu1 %v925_v18  ;;  %v931_v38 = vld [vmem:[%s1207_s5 + $0x20] sm:$0xff]   ;;  %v934_v41 = vld [vmem:[%s1207_s5 + $0x38] sm:$0xff]   ;;  %vm531_vm7 = vcmp.eq.s32.totalorder %v1056_v12, 2  ;;  %vm533_vm9 = vcmp.eq.s32.totalorder %v1056_v12, 3 }
  0x15   :  { %46 = vperm.xlu0 %918, %v37_v4   ;;  %138 = vperm.xlu1 %919, %v38_v7  }
  0x16   :  { %796 = vmatpush3.bf16.msra.mxu0 %v922_v5  ;;  %807 = vmatprep.subr.bf16.mxu1 %v965_v2 }
  0x17   :  { %797 = vmatprep.subr.bf16.mxu0 %v965_v2 }
  0x18   :  { %808 = vmatpush3.bf16.msra.mxu1 %v926_v19 }
  0x19   :  { %920 = vset.pattern.permute.xlu0 %v967_v9  ;;  %143 = vperm.xlu1 %919, %v39_v10  }
  0x1a   :  { %798 = vmatpush3.bf16.msra.mxu0 %v923_v6  ;;  %813 = vmatprep.subr.bf16.mxu1 %v965_v2 }
  0x1b   :  { %799 = vmatprep.subr.bf16.mxu0 %v965_v2 }
  0x1e   :  { %800 = vmatpush3.bf16.msra.mxu0 %v924_v8 }
  0x90   :  { %v44_v13 = vpop.permute.xlu0 %43 }
  0x91   :  { %vm48_vm1 = vcmp.eq.s32.totalorder %v1056_v12, %v44_v13 }
  0x92   :  { %v691_v15 = vsel %vm48_vm1, 1.0, %v965_v2 }
  0x94   :  { %v47_v14 = vpop.permute.xlu0 %46  ;;  %v139_v22 = vpop.permute.xlu1 %138 }
  0x95   :  { %vm49_vm2 = vcmp.eq.s32.totalorder %v1056_v12, %v47_v14 }
  0x96   :  { %v692_v16 = vsel %vm49_vm2, 1.0, %v965_v2 }
  0x97   :  { %v54_v17 = vpack.c.bf16 %v692_v16, %v691_v15 }
  0x98   :  { %v144_v30 = vpop.permute.xlu1 %143 }
  0x99   :  { %802 = vmatmul.mubr.msk.bf16.vlgmr.msra.gmra.mrb[0].mxu0 %vm91_vm3, %v54_v17 }
  0x9a   :  { %845 = vmatprep.mubr.msk.f32.mxu0 %vm966_vm0, %v965_v2 }
 0x16c   :  { %v129_v24 = vpop.f32.mrb[0].mxu0 }
 0x16d   :  { %v130_v25 = vadd.f32 %v751_v21, %v129_v24  ;;  %v803_v26 = vpop.f32.mrb[1].mxu0 }
 0x16e   :  { %v132_v27 = vpop.f32.mrb[2].mxu0 }
 0x16f   :  { %v133_v28 = vadd.f32 %v752_v23, %v132_v27  ;;  %v804_v29 = vpop.f32.mrb[3].mxu0  ;;  %v146_v31 = vmul.f32 %v139_v22, %v130_v25  ;;  %v935_v22 = vld [vmem:[%s1209_s7] sm:$0xff]   ;;  %v936_v23 = vld [vmem:[%s1209_s7 + $0x8] sm:$0xff]  }
 0x171   :  { %v147_v32 = vmul.f32 %v144_v30, %v133_v28 }
 0x173   :  { %v148_v33 = vpack.c.bf16 %v147_v32, %v146_v31 }
 0x175   :  { %810 = vmatmul.mubr.msk.bf16.vlgmr.msra.gmra.mrb[0].mxu1 %vm165_vm4, %v148_v33 }
 0x176   :  { %829 = vmatprep.mubr.msk.bf16.mxu1 %vm966_vm0, %v965_v2  ;;  %814 = vmatpush3.bf16.msra.mxu1 %v927_v34 }
 0x177   :  { %815 = vmatprep.subr.bf16.mxu1 %v965_v2 }
 0x17a   :  { %816 = vmatpush3.bf16.msra.mxu1 %v928_v35 }
 0x17b   :  { %817 = vmatprep.subr.bf16.mxu1 %v965_v2 }
 0x17e   :  { %818 = vmatpush3.bf16.msra.mxu1 %v929_v36  ;;  %v710_v36 = vld [vmem:[%s1208_s6 + $0x1] ss:$0 sm:$0xff] }
 0x17f   :  { %819 = vmatprep.subr.bf16.mxu1 %v965_v2 }
 0x182   :  { %820 = vmatpush3.bf16.msra.mxu1 %v930_v37 }
 0x183   :  { %821 = vmatprep.subr.bf16.mxu1 %v965_v2 }
 0x186   :  { %822 = vmatpush3.bf16.msra.mxu1 %v931_v38 }
 0x187   :  { %823 = vmatprep.subr.bf16.mxu1 %v965_v2 }
 0x18a   :  { %824 = vmatpush3.bf16.msra.mxu1 %v932_v39 }
 0x18b   :  { %825 = vmatprep.subr.bf16.mxu1 %v965_v2 }
 0x18e   :  { %826 = vmatpush3.bf16.msra.mxu1 %v933_v40 }
 0x18f   :  { %827 = vmatprep.subr.bf16.mxu1 %v965_v2 }
 0x192   :  { %828 = vmatpush3.bf16.msra.mxu1 %v934_v41  ;;  %v968_v41 = vmov 0.0|0.0  }
 0x193   :  { %833 = vmatprep.subr.bf16.mxu1 %v965_v2  ;;  %883 = vmatprep.subr.bf16.mxu0 %v968_v41 }
 0x248   :  { %v203_v42 = vpop.f32.mrb[0].mxu1 }
 0x249   :  { %v210_v43 = vmul.f32 %v203_v42, %v203_v42  ;;  %v811_v44 = vpop.f32.mrb[1].mxu1 }
 0x24a   :  { %v206_v45 = vpop.f32.mrb[2].mxu1 }
 0x24b   :  { %v212_v46 = vmul.f32 %v210_v43, %v203_v42  ;;  %v211_v47 = vmul.f32 %v206_v45, %v206_v45  ;;  %v812_v48 = vpop.f32.mrb[3].mxu1  ;;  %v969_v43 = vmov 4294967295  }
 0x24c   :  { %v528_v44 = vsel %vm527_vm5, 3, %v969_v43 }
 0x24d   :  { %v214_v49 = vmul.f32 0.044715, %v212_v46  ;;  %v213_v50 = vmul.f32 %v211_v47, %v206_v45  ;;  %v444_v46 = vstv %s443_s27 }
 0x24f   :  { %v216_v51 = vadd.f32 %v214_v49, %v203_v42  ;;  %v215_v52 = vmul.f32 0.044715, %v213_v50  ;;  %v448_v49 = vstv %s714_s28 }
 0x251   :  { %v218_v53 = vmul.f32 0.7978846, %v216_v51  ;;  %v217_v54 = vadd.f32 %v215_v52, %v206_v45 }
 0x253   :  { %937 = vtanh.f32 %v218_v53  ;;  %v219_v55 = vmul.f32 0.7978846, %v217_v54 }
 0x255   :  { %939 = vtanh.f32 %v219_v55 }
 0x25d   :  { %v938_v56 = vpop.eup %937 }
 0x25e   :  { %v222_v57 = vadd.f32 1.0, %v938_v56 }
 0x25f   :  { %v940_v58 = vpop.eup %939 }
 0x260   :  { %v224_v59 = vmul.f32 0.5, %v222_v57  ;;  %v223_v60 = vadd.f32 1.0, %v940_v58 }
 0x262   :  { %v225_v61 = vmul.f32 0.5, %v223_v60  ;;  %v226_v62 = vmul.f32 %v224_v59, %v203_v42  ;;  %v1133_v42 = vshrl.u32 %v40_v11, 7 }
 0x264   :  { %v227_v63 = vmul.f32 %v225_v61, %v206_v45  ;;  %v530_v45 = vsel %vm529_vm6, 17, %v528_v44  ;;  %vm442_vm8 = vcmp.eq.s32.totalorder %v1133_v42, 0  ;;  %vm446_vm10 = vcmp.eq.s32.totalorder %v1133_v42, 1 }
 0x265   :  { %v532_v47 = vsel %vm531_vm7, 42, %v530_v45  ;;  %v445_v48 = vsel %vm442_vm8, %v444_v46, 4294967295  ;;  %v535_v51 = vadd.s32 8, %v1133_v42  ;;  %v536_v57 = vadd.s32 16, %v1133_v42 }
 0x266   :  { %v228_v0 = vpack.c.bf16 %v227_v63, %v226_v62  ;;  %v1140_v50 = vsel %vm533_vm9, 5, %v532_v47  ;;  %v449_v11 = vsel %vm446_vm10, %v448_v49, %v445_v48  ;;  %v537_v58 = vadd.s32 24, %v1133_v42 }
 0x267   :  { %vm450_vm11 = vcmp.eq.s32.totalorder %v1056_v12, %v449_v11  ;;  %vm550_vm12 = vcmp.eq.s32.totalorder %v1133_v42, %v1140_v50  ;;  %vm551_vm13 = vcmp.eq.s32.totalorder %v535_v51, %v1140_v50  ;;  %vm552_vm1 = vcmp.eq.s32.totalorder %v536_v57, %v1140_v50 }
 0x268   :  { %830 = vmatmul.mubr.bf16.vlgmr.msra.gmra.mrb[4].mxu1 %v228_v0  ;;  %v715_v59 = vsel %vm450_vm11, 1.0, %v965_v2  ;;  %vm887_vm15 = vmpackc.low %vm551_vm13, %vm550_vm12  ;;  %vm553_vm2 = vcmp.eq.s32.totalorder %v537_v58, %v1140_v50  ;;  %v538_v60 = vadd.s32 32, %v1133_v42  ;;  %v539_v61 = vadd.s32 40, %v1133_v42 }
 0x269   :  { %837 = vmatprep.mubr.msk.bf16.mxu1 %vm966_vm0, %v965_v2  ;;  %834 = vmatpush3.bf16.msra.mxu1 %v935_v22  ;;  %v970_v62 = vmov 1.0|1.0   ;;  %vm890_vm3 = vmpackc.low %vm553_vm2, %vm552_vm1  ;;  %v540_v63 = vadd.s32 48, %v1133_v42  ;;  %v541_v0 = vadd.s32 56, %v1133_v42 }
 0x26a   :  { %835 = vmatprep.subr.bf16.mxu1 %v965_v2  ;;  %vm555_vm5 = vcmp.eq.s32.totalorder %v539_v61, %v1140_v50 }
 0x26b   :  { %vm556_vm7 = vcmp.eq.s32.totalorder %v540_v63, %v1140_v50  ;;  %vm557_vm8 = vcmp.eq.s32.totalorder %v541_v0, %v1140_v50 }
 0x26d   :  { %836 = vmatpush3.bf16.msra.mxu1 %v936_v23 }
 0x33b   :  { %v327_v1 = vpop.f32.mrb[4].mxu1 }
 0x33c   :  { %v334_v3 = vadd.f32 %v327_v1, %v146_v31  ;;  %v831_v4 = vpop.f32.mrb[5].mxu1  ;;  %v543_v1 = vadd.s32 72, %v1133_v42 }
 0x33d   :  { %v330_v5 = vpop.f32.mrb[6].mxu1  ;;  %v545_v4 = vadd.s32 88, %v1133_v42 }
 0x33e   :  { %v335_v6 = vadd.f32 %v330_v5, %v147_v32  ;;  %v832_v7 = vpop.f32.mrb[7].mxu1  ;;  %v336_v8 = vsel %vm165_vm4, %v334_v3, 0.0  ;;  %v709_v32 = vld [vmem:[%s1208_s6] ss:$0 sm:$0xff]  ;;  %vm559_vm10 = vcmp.eq.s32.totalorder %v543_v1, %v1140_v50  ;;  %v546_v5 = vadd.s32 96, %v1133_v42 }
 0x33f   :  { %337 = vadd.xlane.f32.xlu0 %v336_v8  ;;  %vm561_vm13 = vcmp.eq.s32.totalorder %v545_v4, %v1140_v50  ;;  %v548_v7 = vadd.s32 112, %v1133_v42  ;;  %v549_v8 = vadd.s32 120, %v1133_v42 }
 0x340   :  { %v339_v9 = vsel %vm165_vm4, %v335_v6, 0.0 }
 0x341   :  { %340 = vadd.xlane.f32.xlu1 %v339_v9 }
 0x3cc   :  { %v338_v10 = vpop.xlane.xlu0 %337 }
 0x3cd   :  { %v343_v13 = vmul.f32 0.03125, %v338_v10 }
 0x3ce   :  { %v341_v14 = vpop.xlane.xlu1 %340 }
 0x3cf   :  { %v345_v15 = vsub.f32 %v334_v3, %v343_v13  ;;  %v344_v16 = vmul.f32 0.03125, %v341_v14  ;;  %v544_v3 = vadd.s32 80, %v1133_v42 }
 0x3d1   :  { %v346_v17 = vsub.f32 %v335_v6, %v344_v16  ;;  %v347_v18 = vmul.f32 %v345_v15, %v345_v15  ;;  %vm560_vm12 = vcmp.eq.s32.totalorder %v544_v3, %v1140_v50  ;;  %v547_v6 = vadd.s32 104, %v1133_v42 }
 0x3d3   :  { %v349_v19 = vsel %vm165_vm4, %v347_v18, 0.0  ;;  %v348_v20 = vmul.f32 %v346_v17, %v346_v17  ;;  %vm563_vm1 = vcmp.eq.s32.totalorder %v547_v6, %v1140_v50 }
 0x3d4   :  { %350 = vadd.xlane.f32.xlu0 %v349_v19 }
 0x3d5   :  { %v352_v21 = vsel %vm165_vm4, %v348_v20, 0.0 }
 0x3d8   :  { %353 = vadd.xlane.f32.xlu0 %v352_v21 }
 0x461   :  { %v351_v24 = vpop.xlane.xlu0 %350 }
 0x462   :  { %v355_v25 = vmul.f32 0.03125, %v351_v24 }
 0x464   :  { %v357_v26 = vadd.f32 1e-05, %v355_v25 }
 0x465   :  { %v354_v27 = vpop.xlane.xlu0 %353 }
 0x466   :  { %941 = vrsqrt.f32 %v357_v26  ;;  %v356_v28 = vmul.f32 0.03125, %v354_v27 }
 0x468   :  { %v358_v29 = vadd.f32 1e-05, %v356_v28 }
 0x46a   :  { %943 = vrsqrt.f32 %v358_v29 }
 0x470   :  { %v942_v30 = vpop.eup %941 }
 0x471   :  { %v361_v31 = vmul.f32 %v942_v30, %v345_v15 }
 0x473   :  { %v368_v34 = vmul.f32 %v709_v32, %v361_v31 }
 0x474   :  { %v944_v33 = vpop.eup %943 }
 0x475   :  { %v362_v35 = vmul.f32 %v944_v33, %v346_v17  ;;  %v375_v38 = vadd.f32 %v710_v36, %v368_v34 }
 0x477   :  { %v369_v37 = vmul.f32 %v709_v32, %v362_v35 }
 0x479   :  { %v376_v39 = vadd.f32 %v710_v36, %v369_v37 }
 0x47b   :  { %v377_v40 = vpack.c.bf16 %v376_v39, %v375_v38 }
 0x47d   :  { %838 = vmatmul.mubr.msk.bf16.vlgmr.msra.gmra.mrb[8].mxu1 %vm165_vm4, %v377_v40  ;;  %vm554_vm4 = vcmp.eq.s32.totalorder %v538_v60, %v1140_v50 }
 0x47e   :  { %vm893_vm6 = vmpackc.low %vm555_vm5, %vm554_vm4  ;;  %vm565_vm4 = vcmp.eq.s32.totalorder %v549_v8, %v1140_v50 }
 0x550   :  { %v431_v52 = vpop.f32.mrb[8].mxu1 }
 0x551   :  { %438 = vst [vmem:[%s1210_s8] sm:$0xff] %v431_v52  ;;  %v839_v53 = vpop.f32.mrb[9].mxu1 }
 0x552   :  { %v434_v54 = vpop.f32.mrb[10].mxu1 }
 0x553   :  { %439 = vst [vmem:[%s1210_s8 + $0x8] sm:$0xff] %v434_v54  ;;  %v884_v55 = vpack.c.bf16 %v434_v54, %v431_v52  ;;  %v840_v56 = vpop.f32.mrb[11].mxu1 }
 0x555   :  { %885 = vmatpush3.bf16.msra.mxu0 %v884_v55 }
 0x556   :  { %886 = vmatprep.subr.bf16.mxu0 %v968_v41 }
 0x558   :  { %846 = vmatmul.mubr.msk.f32.vlgmr.msra.gmra.mrb[4].mxu0 %vm453_vm14, %v715_v59  ;;  %vm902_vm14 = vmpackc.low %vm561_vm13, %vm560_vm12 }
 0x559   :  { %888 = vmatpush3.bf16.msk.msra.mxu0 %vm887_vm15, %v970_v62  ;;  %880 = vmatprep.mubr.msk.f32.mxu0 %vm966_vm0, %v965_v2  ;;  %v542_v2 = vadd.s32 64, %v1133_v42  ;;  %vm896_vm0 = vmpackc.low %vm557_vm8, %vm556_vm7  ;;  %vm562_vm15 = vcmp.eq.s32.totalorder %v546_v5, %v1140_v50 }
 0x55a   :  { %889 = vmatprep.subr.bf16.mxu0 %v968_v41  ;;  %vm905_vm2 = vmpackc.low %vm563_vm1, %vm562_vm15 }
 0x55b   :  { %vm558_vm9 = vcmp.eq.s32.totalorder %v542_v2, %v1140_v50 }
 0x55c   :  { %vm899_vm11 = vmpackc.low %vm559_vm10, %vm558_vm9 }
 0x55d   :  { %891 = vmatpush3.bf16.msk.msra.mxu0 %vm890_vm3, %v970_v62  ;;  %vm564_vm3 = vcmp.eq.s32.totalorder %v548_v7, %v1140_v50 }
 0x55e   :  { %892 = vmatprep.subr.bf16.mxu0 %v968_v41  ;;  %vm908_vm5 = vmpackc.low %vm565_vm4, %vm564_vm3 }
 0x561   :  { %894 = vmatpush3.bf16.msk.msra.mxu0 %vm893_vm6, %v970_v62  ;;  %vm668_vm6 = vcmp.lt.s32.totalorder %v1056_v12, 4 }
 0x562   :  { %895 = vmatprep.subr.bf16.mxu0 %v968_v41 }
 0x565   :  { %897 = vmatpush3.bf16.msk.msra.mxu0 %vm896_vm0, %v970_v62 }
 0x566   :  { %898 = vmatprep.subr.bf16.mxu0 %v968_v41 }
 0x569   :  { %900 = vmatpush3.bf16.msk.msra.mxu0 %vm899_vm11, %v970_v62 }
 0x56a   :  { %901 = vmatprep.subr.bf16.mxu0 %v968_v41 }
 0x56d   :  { %903 = vmatpush3.bf16.msk.msra.mxu0 %vm902_vm14, %v970_v62 }
 0x56e   :  { %904 = vmatprep.subr.bf16.mxu0 %v968_v41 }
 0x571   :  { %906 = vmatpush3.bf16.msk.msra.mxu0 %vm905_vm2, %v970_v62 }
 0x572   :  { %907 = vmatprep.subr.bf16.mxu0 %v968_v41 }
 0x575   :  { %909 = vmatpush3.bf16.msk.msra.mxu0 %vm908_vm5, %v970_v62 }
 0x62b   :  { %v523_v9 = vpop.f32.mrb[4].mxu0 }
 0x62c   :  { %679 = vst [vmem:[%s1211_s9] sm:$0x3] %v523_v9  ;;  %881 = vmatmul.mubr.f32.vlgmr.msra.gmra.mrb[6].mxu0 %v523_v9  ;;  %v847_v10 = vpop.f32.mrb[5].mxu0 }
 0x6ff   :  { %v664_v13 = vpop.f32.mrb[6].mxu0 }
 0x700   :  { %680 = vst [vmem:[%s1211_s9 + $0x2] sm:$0x3] %v664_v13  ;;  %v669_v14 = vsel %vm668_vm6, %v664_v13, -1e+30  ;;  %v882_v15 = vpop.f32.mrb[7].mxu0 }
 0x701   :  { %670 = vmax.xlane.f32.xlu1 %v669_v14 }
 0x78e   :  { %v671_v16 = vpop.xlane.xlu1 %670 }
 0x78f   :  { %v672_v17 = vsub.f32 %v669_v14, %v671_v16 }
 0x791   :  { %v673_v18 = vmul.f32 1.442695, %v672_v17 }
 0x793   :  { %945 = vpow2.f32 %v673_v18 }
 0x79d   :  { %v946_v19 = vpop.eup %945 }
 0x79e   :  { %675 = vadd.xlane.f32.xlu0 %v946_v19 }
 0x82b   :  { %v676_v20 = vpop.xlane.xlu0 %675 }
 0x82c   :  { %947 = vrcp.f32 %v676_v20 }
 0x836   :  { %v948_v21 = vpop.eup %947 }
 0x837   :  { %v678_v22 = vmul.f32 %v948_v21, %v946_v19 }
 0x839   :  { %681 = vst [vmem:[%s1211_s9 + $0x4] sm:$0x3] %v678_v22 }

</bundles_post_ra>
